<compile_context>
chip_gen: v6e
topology: v6e:2x2x1
jax: 0.10.0
libtpu: 0.0.40
codegen_flags: <defaults>
</compile_context>

<pallas_src>
import functools
import math

import jax
import jax.numpy as jnp
import numpy as np
from jax.experimental import pallas as pl
from jax.experimental.pallas import tpu as pltpu


VMEM_BUDGET = 12 * 1024 * 1024        # fits v5e's 16 MiB default scoped VMEM
HP_RESIDENT_BYTES = 6 * 1024 * 1024   # cap for a fully VMEM-resident B operand


def _round_up(x, m):
    return ((x + m - 1) // m) * m


def _col_tile(D):
    if D <= 512:
        return D
    if D % 256 == 0:
        return 256
    return 128


def _row_tile(M):
    # Prefer 256 (v6e/v7x MXU width) but keep >= 2 row tiles for v7x's 2 TCs.
    return 256 if (M % 256 == 0 and M // 256 >= 2) else 128


# ---------------------------------------------------------------------------
# Kernel 1: "small" matmul  out = a @ b + bias   (inner dim kept whole).
#   a is cast to b's (compute) dtype in-kernel, so no wrapper cast copy.
# TODO(synk): the inner dim (input_dim) is not K-tiled here; add a K axis +
# accumulator if input_dim ever becomes very large.
# ---------------------------------------------------------------------------
def _small_mm_kernel(a_ref, b_ref, bias_ref, out_ref):
    acc = jnp.dot(a_ref[...].astype(b_ref.dtype), b_ref[...],
                  preferred_element_type=jnp.float32)
    out_ref[...] = (acc + bias_ref[...]).astype(out_ref.dtype)


def _small_matmul(a, b, bias, out_dtype):
    M, K = a.shape
    Kb, D = b.shape
    assert K == Kb and M % 128 == 0 and D % 128 == 0
    tm = _row_tile(M)
    tn = _col_tile(D)
    grid = (M // tm, D // tn)
    return pl.pallas_call(
        _small_mm_kernel,
        out_shape=jax.ShapeDtypeStruct((M, D), out_dtype),
        grid_spec=pltpu.PrefetchScalarGridSpec(
            num_scalar_prefetch=0,
            grid=grid,
            in_specs=[
                pl.BlockSpec((tm, K), lambda i, j: (i, 0)),
                pl.BlockSpec((K, tn), lambda i, j: (0, j)),
                pl.BlockSpec((1, tn), lambda i, j: (0, j)),
            ],
            out_specs=pl.BlockSpec((tm, tn), lambda i, j: (i, j)),
        ),
        compiler_params=pltpu.CompilerParams(
            dimension_semantics=("parallel", "parallel")),
    )(a, b, bias)


# ---------------------------------------------------------------------------
# Kernel 2: big N^2 matmul  out = a @ b + bias  (f32 output, K-tiled).
#   The output block is resident across K and used as the accumulator:
#   k==0 writes dot + bias, k>0 accumulates.  If b is small it is a single
#   constant-index VMEM-resident block sliced in-kernel (DMA'd once).
# ---------------------------------------------------------------------------
def _big_mm_kernel(a_ref, b_ref, bias_ref, out_ref, *, b_resident, tk):
    k = pl.program_id(2)
    if b_resident:
        start = pl.multiple_of(k * tk, tk)
        b_blk = b_ref[pl.ds(start, tk), :]
    else:
        b_blk = b_ref[...]
    part = jnp.dot(a_ref[...].astype(b_blk.dtype), b_blk,
                   preferred_element_type=jnp.float32)

    @pl.when(k == 0)
    def _():
        out_ref[...] = part + bias_ref[...]

    @pl.when(k > 0)
    def _():
        out_ref[...] += part


def _big_matmul(a, b, bias, *, force_stream_b=False):
    Np, Np2 = a.shape
    Nb, D = b.shape
    assert Np == Np2 == Nb and Np % 128 == 0 and D % 128 == 0

    a_bytes = jnp.dtype(a.dtype).itemsize
    b_bytes = jnp.dtype(b.dtype).itemsize

    tm = _row_tile(Np)
    tn = _col_tile(D)

    resident_bytes = 2 * Np * D * b_bytes
    b_resident = (tn == D) and (resident_bytes <= HP_RESIDENT_BYTES) \
        and not force_stream_b

    tk = 128
    for cand in (1024, 512, 256, 128):
        if Np % cand:
            continue
        fp = 2 * tm * cand * a_bytes + 2 * tm * tn * 4
        fp += resident_bytes if b_resident else 2 * cand * tn * b_bytes
        if fp <= VMEM_BUDGET:
            tk = cand
            break

    grid = (Np // tm, D // tn, Np // tk)
    if b_resident:
        b_spec = pl.BlockSpec((Np, D), lambda i, j, k: (0, 0))
    else:
        b_spec = pl.BlockSpec((tk, tn), lambda i, j, k: (k, j))

    kernel = functools.partial(_big_mm_kernel, b_resident=b_resident, tk=tk)
    return pl.pallas_call(
        kernel,
        out_shape=jax.ShapeDtypeStruct((Np, D), jnp.float32),
        grid_spec=pltpu.PrefetchScalarGridSpec(
            num_scalar_prefetch=0,
            grid=grid,
            in_specs=[
                pl.BlockSpec((tm, tk), lambda i, j, k: (i, k)),
                b_spec,
                pl.BlockSpec((1, tn), lambda i, j, k: (0, j)),
            ],
            out_specs=pl.BlockSpec((tm, tn), lambda i, j, k: (i, j)),
        ),
        compiler_params=pltpu.CompilerParams(
            dimension_semantics=("parallel", "parallel", "arbitrary")),
    )(a, b, bias)


# ---------------------------------------------------------------------------
# Wrapper implementing LGCN.forward: line = line_g @ h_x @ p (+ bias).
# ---------------------------------------------------------------------------
def lgcn_forward(h_x, line_g, p, bias=None, *,
                 compute_dtype=jnp.bfloat16, force_hp_stream=False):
    N, input_dim = h_x.shape
    output_dim = p.shape[1]
    assert line_g.shape == (N, N)
    assert p.shape[0] == input_dim

    Np = _round_up(N, 128)
    Din_p = _round_up(input_dim, 128)
    Dout_p = _round_up(output_dim, 128)

    # line_g: stream the original array directly when N is 128-aligned (no
    # extra Np^2 HBM pass; in-kernel cast feeds the MXU the compute dtype).
    # Only a ragged N triggers a pad copy, fused with the dtype cast.
    # TODO(synk): ragged N could avoid this copy with an in-kernel masked
    # tail tile; kept as a pad since it only affects non-128-multiple N.
    if Np == N:
        lg = line_g
    else:
        lg = jnp.zeros((Np, Np), compute_dtype).at[:N, :N].set(
            line_g.astype(compute_dtype))

    bias_f32 = (bias.astype(jnp.float32) if bias is not None
                else jnp.zeros((output_dim,), jnp.float32))

    if output_dim <= input_dim:
        # line_g @ (h_x @ p): N^2 matmul inner width = output_dim.
        h_x_p = h_x if Np == N else (
            jnp.zeros((Np, input_dim), h_x.dtype).at[:N, :].set(h_x))
        p_pad = jnp.zeros((input_dim, Dout_p), compute_dtype
                          ).at[:, :output_dim].set(p.astype(compute_dtype))
        zero_bias = jnp.zeros((1, Dout_p), jnp.float32)
        hp = _small_matmul(h_x_p, p_pad, zero_bias, compute_dtype)

        bias_pad = jnp.zeros((1, Dout_p), jnp.float32
                             ).at[0, :output_dim].set(bias_f32)
        out = _big_matmul(lg, hp, bias_pad, force_stream_b=force_hp_stream)
    else:
        # (line_g @ h_x) @ p: N^2 matmul inner width = input_dim.
        h_x_pad = jnp.zeros((Np, Din_p), compute_dtype
                            ).at[:N, :input_dim].set(h_x.astype(compute_dtype))
        zero_bias = jnp.zeros((1, Din_p), jnp.float32)
        t = _big_matmul(lg, h_x_pad, zero_bias,
                        force_stream_b=force_hp_stream)     # (Np, Din_p) f32

        p_pad = jnp.zeros((Din_p, Dout_p), compute_dtype
                          ).at[:input_dim, :output_dim].set(
                              p.astype(compute_dtype))
        bias_pad = jnp.zeros((1, Dout_p), jnp.float32
                             ).at[0, :output_dim].set(bias_f32)
        out = _small_matmul(t, p_pad, bias_pad, jnp.float32)

    return out[:N, :output_dim]


# ---------------------------------------------------------------------------
# Self-test
# ---------------------------------------------------------------------------
def _reference(h_x, line_g, p, bias):
    hx = np.asarray(h_x, dtype=np.float64)
    lg = np.asarray(line_g, dtype=np.float64)
    pp = np.asarray(p, dtype=np.float64)
    ref = lg @ hx @ pp
    if bias is not None:
        ref = ref + np.asarray(bias, dtype=np.float64)
    return ref


def _run_case(name, N, input_dim, output_dim, use_bias, compute_dtype,
              rel_tol, force_hp_stream=False, seed=0):
    key = jax.random.PRNGKey(seed)
    k_hx, k_lg, k_p, k_b = jax.random.split(key, 4)
    h_x = jax.random.normal(k_hx, (N, input_dim), dtype=jnp.float32)
    line_g = jax.random.normal(k_lg, (N, N), dtype=jnp.float32)
    stdv = 1.0 / math.sqrt(output_dim)
    p = jax.random.uniform(k_p, (input_dim, output_dim),
                           minval=-stdv, maxval=stdv, dtype=jnp.float32)
    bias = (jax.random.uniform(k_b, (output_dim,), minval=-stdv, maxval=stdv,
                               dtype=jnp.float32) if use_bias else None)

    out = lgcn_forward(h_x, line_g, p, bias,
                       compute_dtype=compute_dtype,
                       force_hp_stream=force_hp_stream)
    out = jax.block_until_ready(out)

    ref = _reference(h_x, line_g, p, bias)
    assert out.shape == ref.shape, (name, out.shape, ref.shape)
    err = np.linalg.norm(np.asarray(out, np.float64) - ref) / (
        np.linalg.norm(ref) + 1e-12)
    assert err < rel_tol, f"{name}: rel err {err:.3e} >= {rel_tol:.1e}"


if __name__ == "__main__":
    # Small shapes consistent with the module's forward (N nodes, features).
    _run_case("caseA_bf16",        16, 32, 16, True,  jnp.bfloat16, 3e-2)
    _run_case("caseA_f32",         16, 32, 16, True,  jnp.float32,  1e-3)
    _run_case("caseA_bf16_stream", 16, 32, 16, True,  jnp.bfloat16, 3e-2,
              force_hp_stream=True)
    _run_case("caseB_bf16",        16, 16, 48, True,  jnp.bfloat16, 3e-2)
    _run_case("aligned_nopad",    256, 32, 16, True,  jnp.bfloat16, 3e-2)
    _run_case("no_bias",           16, 32, 16, False, jnp.bfloat16, 3e-2)

    print("KERNEL_OK")
</pallas_src>

<mosaic_0001>
module attributes {stable_mosaic.version = 11 : i64} {
  func.func @_small_mm_kernel(%arg0: i32, %arg1: i32, %arg2: memref<128x32xf32, #tpu.memory_space<vmem>>, %arg3: memref<32x128xbf16, #tpu.memory_space<vmem>>, %arg4: memref<1x128xf32, #tpu.memory_space<vmem>>, %arg5: memref<128x128xbf16, #tpu.memory_space<vmem>>) attributes {dimension_semantics = [#tpu.dimension_semantics<parallel>, #tpu.dimension_semantics<parallel>], iteration_bounds = array<i64: 1, 1>, scalar_prefetch = 0 : i64, scratch_operands = 0 : i64, tpu.core_type = #tpu.core_type<tc>, window_params = [{transform_indices = @transform_0, window_bounds = array<i64: 128, 32>}, {transform_indices = @transform_1, window_bounds = array<i64: 32, 128>}, {transform_indices = @transform_2, window_bounds = array<i64: 1, 128>}, {transform_indices = @transform_3, window_bounds = array<i64: 128, 128>}]} {
    %c0 = arith.constant 0 : index
    %c0_0 = arith.constant 0 : index
    %0 = vector.load %arg2[%c0, %c0_0] : memref<128x32xf32, #tpu.memory_space<vmem>>, vector<128x32xf32>
    %1 = arith.truncf %0 : vector<128x32xf32> to vector<128x32xbf16>
    %c0_1 = arith.constant 0 : index
    %c0_2 = arith.constant 0 : index
    %2 = vector.load %arg3[%c0_1, %c0_2] : memref<32x128xbf16, #tpu.memory_space<vmem>>, vector<32x128xbf16>
    %cst = arith.constant dense<0.000000e+00> : vector<128x128xf32>
    %3 = tpu.matmul %1, %2, %cst {dimension_numbers = #tpu.dot_dimension_numbers<[1], [0], [0], [1], [0, 0, 1, 1], [], []>} : vector<128x32xbf16>, vector<32x128xbf16>, vector<128x128xf32> -> vector<128x128xf32>
    %c0_3 = arith.constant 0 : index
    %c0_4 = arith.constant 0 : index
    %4 = vector.load %arg4[%c0_3, %c0_4] : memref<1x128xf32, #tpu.memory_space<vmem>>, vector<1x128xf32>
    %5 = vector.broadcast %4 : vector<1x128xf32> to vector<128x128xf32>
    %6 = arith.addf %3, %5 : vector<128x128xf32>
    %7 = arith.truncf %6 : vector<128x128xf32> to vector<128x128xbf16>
    %c0_5 = arith.constant 0 : index
    %c0_6 = arith.constant 0 : index
    %8 = vector.load %arg5[%c0_5, %c0_6] : memref<128x128xbf16, #tpu.memory_space<vmem>>, vector<128x128xbf16>
    tpu.vector_store %arg5[%c0_5, %c0_6], %7 {strides = array<i32>} : memref<128x128xbf16, #tpu.memory_space<vmem>>, vector<128x128xbf16>,
    return
  }
  func.func @transform_0(%arg0: i32, %arg1: i32) -> (i32, i32) {
    %c0_i32 = arith.constant 0 : i32
    %c0_i32_0 = arith.constant 0 : i32
    return %arg0, %c0_i32 : i32, i32
  }
  func.func @transform_1(%arg0: i32, %arg1: i32) -> (i32, i32) {
    %c0_i32 = arith.constant 0 : i32
    %c0_i32_0 = arith.constant 0 : i32
    return %c0_i32, %arg1 : i32, i32
  }
  func.func @transform_2(%arg0: i32, %arg1: i32) -> (i32, i32) {
    %c0_i32 = arith.constant 0 : i32
    %c0_i32_0 = arith.constant 0 : i32
    return %c0_i32, %arg1 : i32, i32
  }
  func.func @transform_3(%arg0: i32, %arg1: i32) -> (i32, i32) {
    %c0_i32 = arith.constant 0 : i32
    return %arg0, %arg1 : i32, i32
  }
}

</mosaic_0001>

<bundles_post_ra>
// kernel: tpu_custom_call.1
= control target key start
LH: loop header
LB: loop body
LE: loop exit
PB: predicated region body
PF: predicated region fallthrough
CT: control target
= control target key end

     0   :  { %vm63_vm0 = vcmask 261120   ;;  %s523_s0 = inlined_call_operand.vmem [shape: f32[128,32], index: 0, kind: input, shape index: {}]   ;;  %s524_s1 = inlined_call_operand.vmem [shape: bf16[32,128], index: 1, kind: input, shape index: {}]   ;;  %s525_s2 = inlined_call_operand.vmem [shape: f32[1,128], index: 2, kind: input, shape index: {}]   ;;  %s526_s3 = inlined_call_operand.hbm [shape: bf16[128,128], index: 3, kind: output, shape index: {}]  }
   0x1   :  { %v408_v0 = vld [vmem:[%s524_s1 + $0x8] sm:$0xff]   ;;  %v409_v1 = vld [vmem:[%s524_s1] sm:$0xff]   ;;  %v18_v7 = vld [vmem:[%s523_s0 + $0x10] sm:$0xff] }
   0x2   :  { %381 = vmatprep.subr.bf16.mxu0 %v408_v0  ;;  %401 = vmatprep.subr.bf16.mxu1 %v408_v0  ;;  %v16_v2 = vld [vmem:[%s523_s0] sm:$0xff]  ;;  %v17_v3 = vld [vmem:[%s523_s0 + $0x8] sm:$0xff]  ;;  %v19_v8 = vld [vmem:[%s523_s0 + $0x18] sm:$0xff] }
   0x3   :  { %v24_v4 = vld [vmem:[%s523_s0 + $0x40] sm:$0xff]  ;;  %382 = vmatpush3.bf16.msra.mxu0 %v408_v0  ;;  %403 = vmatpush3.bf16.msra.mxu1 %v408_v0  ;;  %v32_v5 = vpack.c.bf16 %v17_v3, %v16_v2  ;;  %v25_v6 = vld [vmem:[%s523_s0 + $0x48] sm:$0xff]  ;;  %v26_v10 = vld [vmem:[%s523_s0 + $0x50] sm:$0xff]  ;;  %v33_v16 = vpack.c.bf16 %v19_v8, %v18_v7 }
   0x4   :  { %383 = vmatprep.subr.bf16.mxu0 %v409_v1  ;;  %402 = vmatprep.subr.bf16.mxu1 %v409_v1  ;;  %v36_v9 = vpack.c.bf16 %v25_v6, %v24_v4  ;;  %v27_v11 = vld [vmem:[%s523_s0 + $0x58] sm:$0xff]  ;;  %v20_v12 = vld [vmem:[%s523_s0 + $0x20] sm:$0xff]  ;;  %v21_v13 = vld [vmem:[%s523_s0 + $0x28] sm:$0xff] }
   0x5   :  { %385 = vmatprep.mubr.msk.bf16.mxu0 %vm63_vm0, %v32_v5  ;;  %v28_v14 = vld [vmem:[%s523_s0 + $0x60] sm:$0xff]  ;;  %v29_v15 = vld [vmem:[%s523_s0 + $0x68] sm:$0xff]  ;;  %v37_v17 = vpack.c.bf16 %v27_v11, %v26_v10  ;;  %v34_v18 = vpack.c.bf16 %v21_v13, %v20_v12 }
   0x6   :  { %393 = vmatprep.mubr.msk.bf16.mxu1 %vm63_vm0, %v36_v9  ;;  %v38_v19 = vpack.c.bf16 %v29_v15, %v28_v14 }
   0x7   :  { %384 = vmatpush3.bf16.msra.mxu0 %v409_v1  ;;  %404 = vmatpush3.bf16.msra.mxu1 %v409_v1 }
   0x8   :  { %8 = vsyncpa [#allocation3], 0  ;;  %v22_v20 = vld [vmem:[%s523_s0 + $0x30] sm:$0xff]  ;;  %v23_v21 = vld [vmem:[%s523_s0 + $0x38] sm:$0xff] }
   0x9   :  { %v30_v22 = vld [vmem:[%s523_s0 + $0x70] sm:$0xff]  ;;  %v31_v23 = vld [vmem:[%s523_s0 + $0x78] sm:$0xff]  ;;  %v35_v24 = vpack.c.bf16 %v23_v21, %v22_v20  ;;  %v281_v28 = vld [vmem:[%s525_s2] ss:$0 sm:$0xff]  ;;  %s432_s0 = smov [#allocation2]  }
   0xa   :  { %386 = vmatmul.mubr.msk.bf16.vlgmr.msra.gmra.mxu0 %vm63_vm0, %v33_v16  ;;  %394 = vmatmul.mubr.msk.bf16.vlgmr.msra.gmra.mxu1 %vm63_vm0, %v37_v17  ;;  %v39_v25 = vpack.c.bf16 %v31_v23, %v30_v22  ;;  %s270_s2 = sshll.u32 %s432_s0, 4  ;;  %s271_s2 = int_to_ptr.vmem [resolvable:$true] %s270_s2 }
   0xb   :  { %389 = vmatprep.mubr.msk.bf16.mxu0 %vm63_vm0, %v34_v18  ;;  %397 = vmatprep.mubr.msk.bf16.mxu1 %vm63_vm0, %v38_v19  ;;  %s410_s22 = scalar_lea.vmem %s271_s2, 1024  ;;  %p415_p1 = scmp.lt.s32.totalorder %s271_s2, %s271_s2 }
   0xc   :  { %p411_p0 = scmp.ne.s32.totalorder %s271_s2, %s410_s22  ;;  %p416_p2 = scmp.lt.s32.totalorder %s410_s22, %s410_s22 }
   0xe   :  { %p417_p3 = por %p416_p2, %p415_p1 }
  0x10   :  { %p418_p4 = pnand %p417_p3, %p411_p0 }
  0x12   :  { %390 = vmatmul.mubr.msk.bf16.gmra.mxu0 %vm63_vm0, %v35_v24  ;;  %398 = vmatmul.mubr.msk.bf16.gmra.mxu1 %vm63_vm0, %v39_v25 }
  0xca   :  { %v387_v26 = vpop.f32.mrf.mxu0  ;;  %v395_v27 = vpop.f32.mrf.mxu1 }
  0xcb   :  { %v131_v33 = vadd.f32 %v387_v26, %v281_v28  ;;  %v163_v34 = vadd.f32 %v395_v27, %v281_v28 }
  0xcc   :  { %v122_v29 = vpop.f32.mrf.mxu0  ;;  %v154_v30 = vpop.f32.mrf.mxu1 }
  0xcd   :  { %v123_v37 = vadd.f32 %v281_v28, %v122_v29  ;;  %v155_v38 = vadd.f32 %v281_v28, %v154_v30 }
  0xce   :  { %v388_v31 = vpop.f32.mrf.mxu0  ;;  %v396_v32 = vpop.f32.mrf.mxu1 }
  0xcf   :  { %v134_v35 = vadd.f32 %v388_v31, %v281_v28  ;;  %v166_v36 = vadd.f32 %v396_v32, %v281_v28 }
  0xd0   :  { %v125_v39 = vpop.f32.mrf.mxu0  ;;  %v157_v40 = vpop.f32.mrf.mxu1 }
  0xd1   :  { %v332_v41 = vpack.c.bf16 %v134_v35, %v131_v33  ;;  %v352_v42 = vpack.c.bf16 %v166_v36, %v163_v34  ;;  %v126_v43 = vadd.f32 %v281_v28, %v125_v39  ;;  %v158_v44 = vadd.f32 %v281_v28, %v157_v40 }
  0xd2   :  { %v391_v45 = vpop.f32.mrf.mxu0  ;;  %v399_v46 = vpop.f32.mrf.mxu1 }
  0xd3   :  { %364 = vst [vmem:[#allocation2 + $0x8] sm:$0xff] %v332_v41   ;;  %368 = vst [vmem:[#allocation2 + $0x28] sm:$0xff] %v352_v42   ;;  %v327_v47 = vpack.c.bf16 %v126_v43, %v123_v37  ;;  %v347_v48 = vpack.c.bf16 %v158_v44, %v155_v38  ;;  %v147_v53 = vadd.f32 %v391_v45, %v281_v28 }
  0xd4   :  { %v138_v49 = vpop.f32.mrf.mxu0  ;;  %v170_v50 = vpop.f32.mrf.mxu1  ;;  %v179_v54 = vadd.f32 %v399_v46, %v281_v28 }
  0xd5   :  { %328 = vst [vmem:[#allocation2] sm:$0xff] %v327_v47   ;;  %367 = vst [vmem:[#allocation2 + $0x20] sm:$0xff] %v347_v48   ;;  %v139_v57 = vadd.f32 %v281_v28, %v138_v49  ;;  %v171_v58 = vadd.f32 %v281_v28, %v170_v50 }
  0xd6   :  { %v392_v51 = vpop.f32.mrf.mxu0  ;;  %v400_v52 = vpop.f32.mrf.mxu1 }
  0xd7   :  { %v150_v55 = vadd.f32 %v392_v51, %v281_v28  ;;  %v182_v56 = vadd.f32 %v400_v52, %v281_v28 }
  0xd8   :  { %v141_v59 = vpop.f32.mrf.mxu0  ;;  %v173_v60 = vpop.f32.mrf.mxu1 }
  0xd9   :  { %v342_v61 = vpack.c.bf16 %v150_v55, %v147_v53  ;;  %v362_v62 = vpack.c.bf16 %v182_v56, %v179_v54  ;;  %v142_v63 = vadd.f32 %v281_v28, %v141_v59  ;;  %v174_v0 = vadd.f32 %v281_v28, %v173_v60 }
  0xdb   :  { %366 = vst [vmem:[#allocation2 + $0x18] sm:$0xff] %v342_v61   ;;  %370 = vst [vmem:[#allocation2 + $0x38] sm:$0xff] %v362_v62   ;;  %v337_v1 = vpack.c.bf16 %v142_v63, %v139_v57  ;;  %v357_v2 = vpack.c.bf16 %v174_v0, %v171_v58 }
  0xdd   :  { %365 = vst [vmem:[#allocation2 + $0x10] sm:$0xff] %v337_v1   ;;  %369 = vst [vmem:[#allocation2 + $0x30] sm:$0xff] %v357_v2  }
  0xde   :  { %421 = shalt.err (!%p418_p4)
}
  0xdf   :  { %s433_s1 = smov 64   ;;  %s434_s23 = smov 4  }
  0xe0   :  { %276 = dma.vmem_to_hbm [thread:$0]  %s271_s2, 1024, %s526_s3, [#allocation3], %s433_s1, %s433_s1, %s434_s23  }
  0xe1   :  { %430 = dma.done.wait [#allocation3], 1024  }
  0xe2   :  { %431 = vsyncadd [#allocation3], 4294966272 }
  0xe3   :  { %280 = vsyncpa [#allocation3], 1 }

</bundles_post_ra>
